<compile_context>
chip_gen: v6e
topology: v6e:2x2x1
jax: 0.10.0
libtpu: 0.0.40
codegen_flags: <defaults>
</compile_context>

<pallas_src>
import jax
import jax.numpy as jnp
from jax.experimental import pallas as pl
from jax.experimental.pallas import tpu as pltpu


def actor_net_kernel(x_ref, w1_ref, b1_ref, w2_ref, b2_ref, w3_ref, b3_ref,
                     out_ref):
    cdt = w1_ref.dtype  # MXU compute dtype (bf16)

    # Layer 1: cast the f32 input tile to bf16 in-kernel, accumulate in f32.
    h = jnp.dot(x_ref[...].astype(cdt), w1_ref[...],
                preferred_element_type=jnp.float32)
    # Bias-add / ReLU in f32 (safe on v5e), then cast to bf16 right away so
    # the f32 copy dies early (halves vreg/VMEM spill pressure on v6e/v7x).
    h = jnp.maximum(h + b1_ref[...], 0.0).astype(cdt)

    # Layer 2.
    h = jnp.dot(h, w2_ref[...], preferred_element_type=jnp.float32)
    h = jnp.maximum(h + b2_ref[...], 0.0).astype(cdt)

    # Layer 3 + tanh, over only the real action lanes (output is narrow).
    h = jnp.dot(h, w3_ref[...], preferred_element_type=jnp.float32)
    out_ref[...] = jnp.tanh(h + b3_ref[...]).astype(out_ref.dtype)


def prepare_actor_params(params, compute_dtype=jnp.bfloat16):
    """One-time conversion of stored f32 params into kernel-ready form:
    weights in bf16 (feed the MXU, half the weight DMA), biases f32 (1, out)."""
    w1, b1, w2, b2, w3, b3 = params
    b2d = lambda b: jnp.asarray(b, jnp.float32).reshape(1, -1)
    return (w1.astype(compute_dtype), b2d(b1),
            w2.astype(compute_dtype), b2d(b2),
            w3.astype(compute_dtype), b2d(b3))


def _choose_tiling(batch, block_m):
    """Pick (tm, pad_b): tm multiple of 8, pad_b = n_steps * tm with minimal
    padding, and >= 2 grid steps when the batch allows it (v7x megacore)."""
    pad8 = max(8, pl.cdiv(batch, 8) * 8)
    n_steps = max(2, pl.cdiv(pad8, block_m)) if pad8 >= 16 else 1
    tm = pl.cdiv(pl.cdiv(pad8, n_steps), 8) * 8
    return tm, n_steps * tm


def actor_net_forward(state, prepared_params, *, block_m=512):
    """Fused 3-layer MLP forward, tiled over the batch dimension.

    `prepared_params` must come from prepare_actor_params() (bf16 weights,
    f32 (1, out) biases) — converted once, reused across calls.
    """
    w1, b1, w2, b2, w3, b3 = prepared_params
    batch, d_in = state.shape
    action_size = w3.shape[1]
    out_dtype = state.dtype

    tm, pad_b = _choose_tiling(batch, block_m)
    if pad_b != batch:
        state = jnp.zeros((pad_b, d_in), state.dtype).at[:batch].set(state)

    # Weights/biases: constant block index -> DMA'd once, VMEM-resident,
    # single-buffered (no point double-buffering a block that never changes).
    const = lambda a: pl.BlockSpec(a.shape, lambda i: (0,) * a.ndim,
                                   pipeline_mode=pl.Buffered(1))

    out = pl.pallas_call(
        actor_net_kernel,
        out_shape=jax.ShapeDtypeStruct((pad_b, action_size), out_dtype),
        grid_spec=pltpu.PrefetchScalarGridSpec(
            num_scalar_prefetch=0,
            grid=(pad_b // tm,),
            in_specs=[
                pl.BlockSpec((tm, d_in), lambda i: (i, 0)),  # batch-tiled x (f32)
                const(w1), const(b1),
                const(w2), const(b2),
                const(w3), const(b3),
            ],
            out_specs=pl.BlockSpec((tm, action_size), lambda i: (i, 0)),
        ),
        compiler_params=pltpu.CompilerParams(
            dimension_semantics=("parallel",)),  # megacore split on v7x
    )(state, w1, b1, w2, b2, w3, b3)

    return out[:batch] if pad_b != batch else out


def init_actor_params(key, state_size, action_size):
    """Deterministic init matching PyTorch Linear default (uniform +-1/sqrt(fan_in)).
    Weights stored as (in, out) f32; biases as (1, out) f32."""
    dims = [(state_size * 2, 512), (512, 256), (256, action_size)]
    params = []
    for (fan_in, fan_out) in dims:
        key, kw, kb = jax.random.split(key, 3)
        bound = 1.0 / jnp.sqrt(fan_in)
        w = jax.random.uniform(kw, (fan_in, fan_out), jnp.float32, -bound, bound)
        b = jax.random.uniform(kb, (1, fan_out), jnp.float32, -bound, bound)
        params += [w, b]
    return tuple(params)


def actor_net_reference(state, params):
    """Pure-JAX f32 reference for correctness checking."""
    w1, b1, w2, b2, w3, b3 = params
    h = jnp.maximum(state @ w1 + b1, 0.0)
    h = jnp.maximum(h @ w2 + b2, 0.0)
    return jnp.tanh(h @ w3 + b3)


if __name__ == "__main__":
    state_size = 16
    action_size = 8

    key = jax.random.PRNGKey(0)
    params = init_actor_params(key, state_size, action_size)
    kernel_params = prepare_actor_params(params)  # one-time bf16 conversion

    # Small-batch path (single grid step, tm = 8).
    key, k1 = jax.random.split(key)
    state_small = jax.random.normal(k1, (2, state_size * 2), jnp.float32)
    out_small = jax.block_until_ready(actor_net_forward(state_small, kernel_params))
    ref_small = actor_net_reference(state_small, params)
    assert out_small.shape == (2, action_size), out_small.shape
    err = jnp.max(jnp.abs(out_small - ref_small))
    assert err < 3e-2, f"small-batch max err {err}"  # bf16 weights => relaxed tol

    # Larger batch exercises the tiled grid (2 parallel steps of 192 rows,
    # no batch padding needed).
    key, k2 = jax.random.split(key)
    state_big = jax.random.normal(k2, (384, state_size * 2), jnp.float32)
    out_big = jax.block_until_ready(actor_net_forward(state_big, kernel_params))
    ref_big = actor_net_reference(state_big, params)
    assert out_big.shape == (384, action_size), out_big.shape
    err = jnp.max(jnp.abs(out_big - ref_big))
    assert err < 3e-2, f"big-batch max err {err}"

    print("KERNEL_OK")
</pallas_src>

<mosaic_0001>
module attributes {stable_mosaic.version = 11 : i64} {
  func.func @actor_net_kernel(%arg0: i32, %arg1: memref<8x32xf32, #tpu.memory_space<vmem>>, %arg2: memref<32x512xbf16, #tpu.memory_space<vmem>>, %arg3: memref<1x512xf32, #tpu.memory_space<vmem>>, %arg4: memref<512x256xbf16, #tpu.memory_space<vmem>>, %arg5: memref<1x256xf32, #tpu.memory_space<vmem>>, %arg6: memref<256x8xbf16, #tpu.memory_space<vmem>>, %arg7: memref<1x8xf32, #tpu.memory_space<vmem>>, %arg8: memref<8x8xf32, #tpu.memory_space<vmem>>) attributes {dimension_semantics = [#tpu.dimension_semantics<parallel>], iteration_bounds = array<i64: 1>, scalar_prefetch = 0 : i64, scratch_operands = 0 : i64, tpu.core_type = #tpu.core_type<tc>, window_params = [{transform_indices = @transform_0, window_bounds = array<i64: 8, 32>}, {pipeline_mode = #tpu.pipeline_mode<synchronous>, transform_indices = @transform_1, window_bounds = array<i64: 32, 512>}, {pipeline_mode = #tpu.pipeline_mode<synchronous>, transform_indices = @transform_2, window_bounds = array<i64: 1, 512>}, {pipeline_mode = #tpu.pipeline_mode<synchronous>, transform_indices = @transform_3, window_bounds = array<i64: 512, 256>}, {pipeline_mode = #tpu.pipeline_mode<synchronous>, transform_indices = @transform_4, window_bounds = array<i64: 1, 256>}, {pipeline_mode = #tpu.pipeline_mode<synchronous>, transform_indices = @transform_5, window_bounds = array<i64: 256, 8>}, {pipeline_mode = #tpu.pipeline_mode<synchronous>, transform_indices = @transform_6, window_bounds = array<i64: 1, 8>}, {transform_indices = @transform_7, window_bounds = array<i64: 8, 8>}]} {
    %c0 = arith.constant 0 : index
    %c0_0 = arith.constant 0 : index
    %0 = vector.load %arg1[%c0, %c0_0] : memref<8x32xf32, #tpu.memory_space<vmem>>, vector<8x32xf32>
    %1 = arith.truncf %0 : vector<8x32xf32> to vector<8x32xbf16>
    %c0_1 = arith.constant 0 : index
    %c0_2 = arith.constant 0 : index
    %2 = vector.load %arg2[%c0_1, %c0_2] : memref<32x512xbf16, #tpu.memory_space<vmem>>, vector<32x512xbf16>
    %cst = arith.constant dense<0.000000e+00> : vector<8x512xf32>
    %3 = tpu.matmul %1, %2, %cst {dimension_numbers = #tpu.dot_dimension_numbers<[1], [0], [0], [1], [0, 0, 1, 1], [], []>} : vector<8x32xbf16>, vector<32x512xbf16>, vector<8x512xf32> -> vector<8x512xf32>
    %c0_3 = arith.constant 0 : index
    %c0_4 = arith.constant 0 : index
    %4 = vector.load %arg3[%c0_3, %c0_4] : memref<1x512xf32, #tpu.memory_space<vmem>>, vector<1x512xf32>
    %5 = vector.broadcast %4 : vector<1x512xf32> to vector<8x512xf32>
    %6 = arith.addf %3, %5 : vector<8x512xf32>
    %cst_5 = arith.constant 0.000000e+00 : f32
    %7 = vector.broadcast %cst_5 : f32 to vector<8x512xf32>
    %8 = arith.maximumf %6, %7 : vector<8x512xf32>
    %9 = arith.truncf %8 : vector<8x512xf32> to vector<8x512xbf16>
    %c0_6 = arith.constant 0 : index
    %c0_7 = arith.constant 0 : index
    %10 = vector.load %arg4[%c0_6, %c0_7] : memref<512x256xbf16, #tpu.memory_space<vmem>>, vector<512x256xbf16>
    %cst_8 = arith.constant dense<0.000000e+00> : vector<8x256xf32>
    %11 = tpu.matmul %9, %10, %cst_8 {dimension_numbers = #tpu.dot_dimension_numbers<[1], [0], [0], [1], [0, 0, 1, 1], [], []>} : vector<8x512xbf16>, vector<512x256xbf16>, vector<8x256xf32> -> vector<8x256xf32>
    %c0_9 = arith.constant 0 : index
    %c0_10 = arith.constant 0 : index
    %12 = vector.load %arg5[%c0_9, %c0_10] : memref<1x256xf32, #tpu.memory_space<vmem>>, vector<1x256xf32>
    %13 = vector.broadcast %12 : vector<1x256xf32> to vector<8x256xf32>
    %14 = arith.addf %11, %13 : vector<8x256xf32>
    %cst_11 = arith.constant 0.000000e+00 : f32
    %15 = vector.broadcast %cst_11 : f32 to vector<8x256xf32>
    %16 = arith.maximumf %14, %15 : vector<8x256xf32>
    %17 = arith.truncf %16 : vector<8x256xf32> to vector<8x256xbf16>
    %c0_12 = arith.constant 0 : index
    %c0_13 = arith.constant 0 : index
    %18 = vector.load %arg6[%c0_12, %c0_13] : memref<256x8xbf16, #tpu.memory_space<vmem>>, vector<256x8xbf16>
    %cst_14 = arith.constant dense<0.000000e+00> : vector<8x8xf32>
    %19 = tpu.matmul %17, %18, %cst_14 {dimension_numbers = #tpu.dot_dimension_numbers<[1], [0], [0], [1], [0, 0, 1, 1], [], []>} : vector<8x256xbf16>, vector<256x8xbf16>, vector<8x8xf32> -> vector<8x8xf32>
    %c0_15 = arith.constant 0 : index
    %c0_16 = arith.constant 0 : index
    %20 = vector.load %arg7[%c0_15, %c0_16] : memref<1x8xf32, #tpu.memory_space<vmem>>, vector<1x8xf32>
    %21 = vector.broadcast %20 : vector<1x8xf32> to vector<8x8xf32>
    %22 = arith.addf %19, %21 : vector<8x8xf32>
    %23 = math.tanh %22 : vector<8x8xf32>
    %c0_17 = arith.constant 0 : index
    %c0_18 = arith.constant 0 : index
    %24 = vector.load %arg8[%c0_17, %c0_18] : memref<8x8xf32, #tpu.memory_space<vmem>>, vector<8x8xf32>
    tpu.vector_store %arg8[%c0_17, %c0_18], %23 {strides = array<i32>} : memref<8x8xf32, #tpu.memory_space<vmem>>, vector<8x8xf32>,
    return
  }
  func.func @transform_0(%arg0: i32) -> (i32, i32) {
    %c0_i32 = arith.constant 0 : i32
    %c0_i32_0 = arith.constant 0 : i32
    return %arg0, %c0_i32 : i32, i32
  }
  func.func @transform_1(%arg0: i32) -> (i32, i32) {
    %c0_i32 = arith.constant 0 : i32
    %c0_i32_0 = arith.constant 0 : i32
    %c0_i32_1 = arith.constant 0 : i32
    return %c0_i32, %c0_i32_0 : i32, i32
  }
  func.func @transform_2(%arg0: i32) -> (i32, i32) {
    %c0_i32 = arith.constant 0 : i32
    %c0_i32_0 = arith.constant 0 : i32
    %c0_i32_1 = arith.constant 0 : i32
    return %c0_i32, %c0_i32_0 : i32, i32
  }
  func.func @transform_3(%arg0: i32) -> (i32, i32) {
    %c0_i32 = arith.constant 0 : i32
    %c0_i32_0 = arith.constant 0 : i32
    %c0_i32_1 = arith.constant 0 : i32
    return %c0_i32, %c0_i32_0 : i32, i32
  }
  func.func @transform_4(%arg0: i32) -> (i32, i32) {
    %c0_i32 = arith.constant 0 : i32
    %c0_i32_0 = arith.constant 0 : i32
    %c0_i32_1 = arith.constant 0 : i32
    return %c0_i32, %c0_i32_0 : i32, i32
  }
  func.func @transform_5(%arg0: i32) -> (i32, i32) {
    %c0_i32 = arith.constant 0 : i32
    %c0_i32_0 = arith.constant 0 : i32
    %c0_i32_1 = arith.constant 0 : i32
    return %c0_i32, %c0_i32_0 : i32, i32
  }
  func.func @transform_6(%arg0: i32) -> (i32, i32) {
    %c0_i32 = arith.constant 0 : i32
    %c0_i32_0 = arith.constant 0 : i32
    %c0_i32_1 = arith.constant 0 : i32
    return %c0_i32, %c0_i32_0 : i32, i32
  }
  func.func @transform_7(%arg0: i32) -> (i32, i32) {
    %c0_i32 = arith.constant 0 : i32
    %c0_i32_0 = arith.constant 0 : i32
    return %arg0, %c0_i32 : i32, i32
  }
}

</mosaic_0001>

<bundles_post_ra>
// kernel: tpu_custom_call.1
= control target key start
LH: loop header
LB: loop body
LE: loop exit
PB: predicated region body
PF: predicated region fallthrough
CT: control target
= control target key end

     0   :  { %12 = vsyncpa [#allocation3], 0  ;;  %s1322_s0 = inlined_call_operand.vmem [shape: f32[8,32], index: 0, kind: input, shape index: {}]   ;;  %s1323_s1 = inlined_call_operand.vmem [shape: bf16[32,512], index: 1, kind: input, shape index: {}]   ;;  %s1324_s2 = inlined_call_operand.vmem [shape: f32[1,512], index: 2, kind: input, shape index: {}]   ;;  %s1325_s3 = inlined_call_operand.hbm [shape: bf16[512,256], index: 3, kind: input, shape index: {}]   ;;  %s1326_s4 = inlined_call_operand.vmem [shape: f32[1,256], index: 4, kind: input, shape index: {}]   ;;  %s1327_s5 = inlined_call_operand.vmem [shape: bf16[256,8], index: 5, kind: input, shape index: {}]   ;;  %s1328_s6 = inlined_call_operand.vmem [shape: f32[1,8], index: 6, kind: input, shape index: {}]   ;;  %s1329_s7 = inlined_call_operand.hbm [shape: f32[8,8], index: 7, kind: output, shape index: {}]  }
   0x1   :  { %13 = vsyncpa [#allocation4], 0  ;;  %s1171_s24 = smov [#allocation2]  }
   0x2   :  { %s25_s25 = sshll.u32 %s1171_s24, 4  ;;  %s26_s25 = int_to_ptr.vmem [resolvable:$true] %s25_s25 }
   0x3   :  { %s1135_s26 = scalar_lea.vmem %s26_s25, 8192  ;;  %p1140_p1 = scmp.lt.s32.totalorder %s26_s25, %s26_s25 }
   0x4   :  { %p1136_p0 = scmp.ne.s32.totalorder %s26_s25, %s1135_s26  ;;  %p1141_p2 = scmp.lt.s32.totalorder %s1135_s26, %s1135_s26 }
   0x6   :  { %p1142_p3 = por %p1141_p2, %p1140_p1 }
   0x8   :  { %p1143_p4 = pnand %p1142_p3, %p1136_p0 }
   0xa   :  { %1146 = shalt.err (!%p1143_p4)
}
   0xb   :  { %s1172_s27 = smov 128   ;;  %s1173_s28 = smov 8  }
   0xc   :  { %31 = dma.hbm_to_vmem [thread:$0]  %s1325_s3, 8192, %s26_s25, [#allocation3], %s1172_s27, %s1172_s27, %s1173_s28  }
   0xd   :  { %1167 = dma.done.wait [#allocation3], 8192  }
   0xe   :  { %1168 = vsyncadd [#allocation3], 4294959104  ;;  %v1174_v0 = vmov 0   ;;  %v1001_v1 = vld [vmem:[%s1323_s1 + $0x24] ss:$16 sps:$4 sm:$0xff]   ;;  %vm114_vm0 = vcmask 261120  }
   0xf   :  { %150 = vmatprep.mubr.bf16.mxu1 %v1174_v0  ;;  %v1003_v2 = vld [vmem:[%s1323_s1 + $0x20] ss:$16 sps:$4 sm:$0xff]   ;;  %130 = vmatprep.subr.bf16.mxu1 %v1001_v1  ;;  %v1004_v3 = vld [vmem:[%s1323_s1 + $0x4] ss:$16 sps:$4 sm:$0xff]   ;;  %v1009_v6 = vld [vmem:[%s1323_s1 + $0x2c] ss:$16 sps:$4 sm:$0xff]  }
  0x10   :  { %v1006_v4 = vld [vmem:[%s1323_s1] ss:$16 sps:$4 sm:$0xff]   ;;  %131 = vmatpush1.bf16.msra.mxu1 %v1003_v2  ;;  %v1007_v7 = vld [vmem:[%s1323_s1 + $0x28] ss:$16 sps:$4 sm:$0xff]   ;;  %v1013_v9 = vld [vmem:[#allocation2 + $0x74] ss:$8 sps:$4 sm:$0xff]  }
  0x11   :  { %v42_v5 = vld [vmem:[%s1322_s0] sm:$0xff]  ;;  %132 = vmatprep.subr.bf16.mxu1 %v1004_v3  ;;  %v1015_v10 = vld [vmem:[#allocation2 + $0x70] ss:$8 sps:$4 sm:$0xff]   ;;  %v1012_v12 = vld [vmem:[%s1323_s1 + $0xc] ss:$16 sps:$4 sm:$0xff]   ;;  %604 = vmatprep.subr.bf16.mxu0 %v1013_v9  ;;  %s1175_s8 = smov [#allocation5]  }
  0x12   :  { %v43_v8 = vpack.c.bf16 %v42_v5, %v42_v5  ;;  %v1016_v11 = vld [vmem:[#allocation2 + $0x64] ss:$8 sps:$4 sm:$0xff]   ;;  %605 = vmatpush1.bf16.msra.mxu0 %v1015_v10  ;;  %v1018_v13 = vld [vmem:[#allocation2 + $0x60] ss:$8 sps:$4 sm:$0xff]   ;;  %v1019_v14 = vld [vmem:[#allocation2 + $0x54] ss:$8 sps:$4 sm:$0xff]  }
  0x13   :  { %606 = vmatprep.subr.bf16.mxu0 %v1016_v11  ;;  %v1010_v15 = vld [vmem:[%s1323_s1 + $0x8] ss:$16 sps:$4 sm:$0xff]   ;;  %v1023_v16 = vld [vmem:[#allocation2 + $0x174] ss:$8 sps:$4 sm:$0xff]   ;;  %v1025_v18 = vld [vmem:[#allocation2 + $0x44] ss:$8 sps:$4 sm:$0xff]  }
  0x14   :  { %133 = vmatpush1.bf16.msra.mxu1 %v1006_v4  ;;  %v1024_v17 = vld [vmem:[#allocation2 + $0x50] ss:$8 sps:$4 sm:$0xff]   ;;  %v1029_v20 = vld [vmem:[#allocation2 + $0x164] ss:$8 sps:$4 sm:$0xff]   ;;  %v1030_v21 = vld [vmem:[#allocation2 + $0x40] ss:$8 sps:$4 sm:$0xff]  }
  0x15   :  { %171 = vmatprep.subr.bf16.mxu1 %v1009_v6  ;;  %v1021_v19 = vld [vmem:[#allocation2 + $0x170] ss:$8 sps:$4 sm:$0xff]   ;;  %v1031_v22 = vld [vmem:[#allocation2 + $0x34] ss:$8 sps:$4 sm:$0xff]   ;;  %v1027_v23 = vld [vmem:[#allocation2 + $0x160] ss:$8 sps:$4 sm:$0xff]  }
  0x16   :  { %607 = vmatpush1.bf16.msra.mxu0 %v1018_v13  ;;  %v1035_v24 = vld [vmem:[#allocation2 + $0x154] ss:$8 sps:$4 sm:$0xff]   ;;  %v1036_v25 = vld [vmem:[#allocation2 + $0x30] ss:$8 sps:$4 sm:$0xff]   ;;  %v1037_v26 = vld [vmem:[#allocation2 + $0x24] ss:$8 sps:$4 sm:$0xff]  }
  0x17   :  { %891 = vmatmul.mubr.msk.bf16.vlgmr.msra.gmra.mxu1 %vm114_vm0, %v43_v8  ;;  %608 = vmatprep.subr.bf16.mxu0 %v1019_v14  ;;  %v1033_v27 = vld [vmem:[#allocation2 + $0x150] ss:$8 sps:$4 sm:$0xff]   ;;  %v1041_v28 = vld [vmem:[#allocation2 + $0x144] ss:$8 sps:$4 sm:$0xff]   ;;  %v1042_v29 = vld [vmem:[#allocation2 + $0x20] ss:$8 sps:$4 sm:$0xff]  }
  0x18   :  { %172 = vmatpush1.bf16.msra.mxu1 %v1007_v7  ;;  %191 = vmatprep.mubr.bf16.mxu1 %v1174_v0  ;;  %v1043_v30 = vld [vmem:[#allocation2 + $0x14] ss:$8 sps:$4 sm:$0xff]   ;;  %v1039_v31 = vld [vmem:[#allocation2 + $0x140] ss:$8 sps:$4 sm:$0xff]   ;;  %v1048_v33 = vld [vmem:[#allocation2 + $0x10] ss:$8 sps:$4 sm:$0xff]  }
  0x19   :  { %173 = vmatprep.subr.bf16.mxu1 %v1012_v12  ;;  %v1047_v32 = vld [vmem:[#allocation2 + $0x134] ss:$8 sps:$4 sm:$0xff]   ;;  %v1049_v34 = vld [vmem:[#allocation2 + $0x4] ss:$8 sps:$4 sm:$0xff]   ;;  %v1045_v35 = vld [vmem:[#allocation2 + $0x130] ss:$8 sps:$4 sm:$0xff]   ;;  %v54_v12 = vlaneseq }
  0x1a   :  { %609 = vmatpush1.bf16.msra.mxu0 %v1024_v17  ;;  %v1053_v36 = vld [vmem:[#allocation2 + $0x124] ss:$8 sps:$4 sm:$0xff]   ;;  %v1054_v37 = vld [vmem:[#allocation2] ss:$8 sps:$4 sm:$0xff]   ;;  %v1055_v38 = vld [vmem:[#allocation2 + $0xf4] ss:$8 sps:$4 sm:$0xff]  }
  0x1b   :  { %610 = vmatprep.subr.bf16.mxu0 %v1025_v18  ;;  %v1051_v39 = vld [vmem:[#allocation2 + $0x120] ss:$8 sps:$4 sm:$0xff]   ;;  %v1059_v40 = vld [vmem:[#allocation2 + $0x114] ss:$8 sps:$4 sm:$0xff]   ;;  %v1060_v41 = vld [vmem:[#allocation2 + $0xf0] ss:$8 sps:$4 sm:$0xff]  }
  0x1c   :  { %174 = vmatpush1.bf16.msra.mxu1 %v1010_v15  ;;  %v1061_v42 = vld [vmem:[#allocation2 + $0xe4] ss:$8 sps:$4 sm:$0xff]   ;;  %v1057_v43 = vld [vmem:[#allocation2 + $0x110] ss:$8 sps:$4 sm:$0xff]   ;;  %v1066_v45 = vld [vmem:[#allocation2 + $0xe0] ss:$8 sps:$4 sm:$0xff]  }
  0x1d   :  { %645 = vmatprep.subr.bf16.mxu1 %v1023_v16  ;;  %v1065_v44 = vld [vmem:[#allocation2 + $0x104] ss:$8 sps:$4 sm:$0xff]   ;;  %v1067_v46 = vld [vmem:[#allocation2 + $0xd4] ss:$8 sps:$4 sm:$0xff]   ;;  %v1063_v47 = vld [vmem:[#allocation2 + $0x100] ss:$8 sps:$4 sm:$0xff]  }
  0x1e   :  { %611 = vmatpush1.bf16.msra.mxu0 %v1030_v21  ;;  %v1071_v48 = vld [vmem:[#allocation2 + $0x1f4] ss:$8 sps:$4 sm:$0xff]   ;;  %v1072_v49 = vld [vmem:[#allocation2 + $0xd0] ss:$8 sps:$4 sm:$0xff]   ;;  %v1073_v50 = vld [vmem:[#allocation2 + $0xc4] ss:$8 sps:$4 sm:$0xff]  }
  0x1f   :  { %892 = vmatmul.mubr.msk.bf16.vlgmr.msra.gmra.mxu1 %vm114_vm0, %v43_v8  ;;  %612 = vmatprep.subr.bf16.mxu0 %v1031_v22  ;;  %v1069_v51 = vld [vmem:[#allocation2 + $0x1f0] ss:$8 sps:$4 sm:$0xff]   ;;  %v1077_v52 = vld [vmem:[#allocation2 + $0x1e4] ss:$8 sps:$4 sm:$0xff]   ;;  %v1078_v53 = vld [vmem:[#allocation2 + $0xc0] ss:$8 sps:$4 sm:$0xff]  }
  0x20   :  { %646 = vmatpush1.bf16.msra.mxu1 %v1021_v19  ;;  %v1079_v54 = vld [vmem:[#allocation2 + $0xb4] ss:$8 sps:$4 sm:$0xff]   ;;  %v1075_v55 = vld [vmem:[#allocation2 + $0x1e0] ss:$8 sps:$4 sm:$0xff]   ;;  %v1084_v57 = vld [vmem:[#allocation2 + $0xb0] ss:$8 sps:$4 sm:$0xff]  }
  0x21   :  { %647 = vmatprep.subr.bf16.mxu1 %v1029_v20  ;;  %v1083_v56 = vld [vmem:[#allocation2 + $0x1d4] ss:$8 sps:$4 sm:$0xff]   ;;  %v1085_v58 = vld [vmem:[#allocation2 + $0xa4] ss:$8 sps:$4 sm:$0xff]   ;;  %v1081_v59 = vld [vmem:[#allocation2 + $0x1d0] ss:$8 sps:$4 sm:$0xff]  }
  0x22   :  { %613 = vmatpush1.bf16.msra.mxu0 %v1036_v25  ;;  %v1089_v60 = vld [vmem:[#allocation2 + $0x1c4] ss:$8 sps:$4 sm:$0xff]   ;;  %v1090_v61 = vld [vmem:[#allocation2 + $0xa0] ss:$8 sps:$4 sm:$0xff]   ;;  %v1091_v63 = vld [vmem:[#allocation2 + $0x94] ss:$8 sps:$4 sm:$0xff]  }
  0x23   :  { %614 = vmatprep.subr.bf16.mxu0 %v1037_v26  ;;  %v1087_v62 = vld [vmem:[#allocation2 + $0x1c0] ss:$8 sps:$4 sm:$0xff]   ;;  %v1095_v0 = vld [vmem:[#allocation2 + $0x1b4] ss:$8 sps:$4 sm:$0xff]   ;;  %v1093_v1 = vld [vmem:[#allocation2 + $0x1b0] ss:$8 sps:$4 sm:$0xff]  }
  0x24   :  { %648 = vmatpush1.bf16.msra.mxu1 %v1027_v23  ;;  %v1096_v2 = vld [vmem:[#allocation2 + $0x90] ss:$8 sps:$4 sm:$0xff]   ;;  %v1097_v3 = vld [vmem:[#allocation2 + $0x84] ss:$8 sps:$4 sm:$0xff]   ;;  %v1099_v5 = vld [vmem:[#allocation2 + $0x1a0] ss:$8 sps:$4 sm:$0xff]  }
  0x25   :  { %649 = vmatprep.subr.bf16.mxu1 %v1035_v24  ;;  %v1101_v4 = vld [vmem:[#allocation2 + $0x1a4] ss:$8 sps:$4 sm:$0xff]   ;;  %v1102_v6 = vld [vmem:[#allocation2 + $0x80] ss:$8 sps:$4 sm:$0xff]   ;;  %v1105_v7 = vld [vmem:[#allocation2 + $0x194] ss:$8 sps:$4 sm:$0xff]  }
  0x26   :  { %615 = vmatpush1.bf16.msra.mxu0 %v1042_v29  ;;  %v1103_v8 = vld [vmem:[#allocation2 + $0x190] ss:$8 sps:$4 sm:$0xff]   ;;  %v1108_v9 = vld [vmem:[#allocation2 + $0x184] ss:$8 sps:$4 sm:$0xff]   ;;  %v1106_v10 = vld [vmem:[#allocation2 + $0x180] ss:$8 sps:$4 sm:$0xff]  }
  0x27   :  { %616 = vmatprep.subr.bf16.mxu0 %v1043_v30  ;;  %v1109_v11 = vld [vmem:[%s1327_s5 + $0x78] sm:$0xff]   ;;  %v1251_v13 = vshrl.u32 %v54_v12, 7  ;;  %v52_v15 = vld [vmem:[%s1324_s2] sm:$0xf]  ;;  %s874_s9 = sshll.u32 %s1175_s8, 4  ;;  %vm866_vm1 = vcmask 64512   ;;  %s875_s9 = int_to_ptr.vmem [resolvable:$true] %s874_s9 }
  0x28   :  { %650 = vmatpush1.bf16.msra.mxu1 %v1033_v27  ;;  %s1147_s10 = scalar_lea.vmem %s875_s9, 128  ;;  %p1152_p6 = scmp.lt.s32.totalorder %s875_s9, %s875_s9 }
  0x29   :  { %651 = vmatprep.subr.bf16.mxu1 %v1041_v28  ;;  %v56_v14 = vsub.s32 0, %v1251_v13  ;;  %v60_v16 = vsub.s32 1, %v1251_v13  ;;  %v64_v21 = vsub.s32 2, %v1251_v13  ;;  %v68_v24 = vsub.s32 3, %v1251_v13  ;;  %v957_v13 = vld [vmem:[%s1328_s6] ss:$0 sm:$0xff]  ;;  %p1148_p5 = scmp.ne.s32.totalorder %s875_s9, %s1147_s10  ;;  %p1153_p7 = scmp.lt.s32.totalorder %s1147_s10, %s1147_s10 }
  0x2a   :  { %617 = vmatpush1.bf16.msra.mxu0 %v1048_v33 }
  0x2b   :  { %618 = vmatprep.subr.bf16.mxu0 %v1049_v34  ;;  %v57_v17 = vrot.slane %v52_v15, %v56_v14  ;;  %v61_v18 = vrot.slane %v52_v15, %v60_v16  ;;  %v65_v27 = vrot.slane %v52_v15, %v64_v21  ;;  %p1154_p8 = por %p1153_p7, %p1152_p6 }
  0x2c   :  { %652 = vmatpush1.bf16.msra.mxu1 %v1039_v31  ;;  %v69_v31 = vrot.slane %v52_v15, %v68_v24 }
  0x2d   :  { %653 = vmatprep.subr.bf16.mxu1 %v1047_v32  ;;  %v1110_v32 = vld [vmem:[%s1327_s5 + $0x38] sm:$0xff]   ;;  %p1155_p9 = pnand %p1154_p8, %p1148_p5 }
  0x2e   :  { %619 = vmatpush1.bf16.msra.mxu0 %v1054_v37 }
  0x2f   :  { %620 = vmatprep.subr.bf16.mxu0 %v1055_v38 }
  0x30   :  { %654 = vmatpush1.bf16.msra.mxu1 %v1045_v35  ;;  %v1111_v35 = vld [vmem:[%s1327_s5 + $0x70] sm:$0xff]  }
  0x31   :  { %655 = vmatprep.subr.bf16.mxu1 %v1053_v36 }
  0x32   :  { %621 = vmatpush2.bf16.msra.mxu0 %v1060_v41 }
  0x33   :  { %622 = vmatprep.subr.bf16.mxu0 %v1061_v42  ;;  %v1113_v42 = vld [vmem:[%s1327_s5 + $0x68] sm:$0xff]  }
  0x34   :  { %656 = vmatpush1.bf16.msra.mxu1 %v1051_v39  ;;  %v1112_v39 = vld [vmem:[%s1327_s5 + $0x30] sm:$0xff]  }
  0x35   :  { %657 = vmatprep.subr.bf16.mxu1 %v1059_v40 }
  0x36   :  { %623 = vmatpush2.bf16.msra.mxu0 %v1066_v45 }
  0x37   :  { %624 = vmatprep.subr.bf16.mxu0 %v1067_v46  ;;  %v1114_v46 = vld [vmem:[%s1327_s5 + $0x28] sm:$0xff]  }
  0x38   :  { %658 = vmatpush1.bf16.msra.mxu1 %v1057_v43 }
  0x39   :  { %659 = vmatprep.subr.bf16.mxu1 %v1065_v44 }
  0x3a   :  { %625 = vmatpush2.bf16.msra.mxu0 %v1072_v49  ;;  %v1116_v49 = vld [vmem:[%s1327_s5 + $0x20] sm:$0xff]  }
  0x3b   :  { %626 = vmatprep.subr.bf16.mxu0 %v1073_v50  ;;  %v1117_v50 = vld [vmem:[%s1327_s5 + $0x58] sm:$0xff]  }
  0x3c   :  { %660 = vmatpush1.bf16.msra.mxu1 %v1063_v47 }
  0x3d   :  { %661 = vmatprep.subr.bf16.mxu1 %v1071_v48  ;;  %v1115_v48 = vld [vmem:[%s1327_s5 + $0x60] sm:$0xff]  }
  0x3e   :  { %627 = vmatpush2.bf16.msra.mxu0 %v1078_v53  ;;  %v1120_v53 = vld [vmem:[%s1327_s5 + $0x10] sm:$0xff]  }
  0x3f   :  { %628 = vmatprep.subr.bf16.mxu0 %v1079_v54  ;;  %v1121_v54 = vld [vmem:[%s1327_s5 + $0x48] sm:$0xff]  }
  0x40   :  { %662 = vmatpush2.bf16.msra.mxu1 %v1069_v51  ;;  %v1118_v51 = vld [vmem:[%s1327_s5 + $0x18] sm:$0xff]  }
  0x41   :  { %663 = vmatprep.subr.bf16.mxu1 %v1077_v52  ;;  %v1119_v52 = vld [vmem:[%s1327_s5 + $0x50] sm:$0xff]  }
  0x42   :  { %629 = vmatpush2.bf16.msra.mxu0 %v1084_v57  ;;  %v1124_v57 = vld [vmem:[%s1327_s5] sm:$0xff]  }
  0x43   :  { %630 = vmatprep.subr.bf16.mxu0 %v1085_v58  ;;  %v272_v58 = vld [vmem:[%s1326_s4] sm:$0x3] }
  0x44   :  { %664 = vmatpush2.bf16.msra.mxu1 %v1075_v55  ;;  %v1122_v55 = vld [vmem:[%s1327_s5 + $0x8] sm:$0xff]  }
  0x45   :  { %665 = vmatprep.subr.bf16.mxu1 %v1083_v56  ;;  %v1123_v56 = vld [vmem:[%s1327_s5 + $0x40] sm:$0xff]  }
  0x46   :  { %631 = vmatpush2.bf16.msra.mxu0 %v1090_v61  ;;  %v277_v61 = vrot.slane %v272_v58, %v56_v14 }
  0x47   :  { %632 = vmatprep.subr.bf16.mxu0 %v1091_v63  ;;  %v281_v63 = vrot.slane %v272_v58, %v60_v16 }
  0x48   :  { %666 = vmatpush2.bf16.msra.mxu1 %v1081_v59 }
  0x49   :  { %667 = vmatprep.subr.bf16.mxu1 %v1089_v60 }
  0x4a   :  { %633 = vmatpush2.bf16.msra.mxu0 %v1096_v2 }
  0x4b   :  { %634 = vmatprep.subr.bf16.mxu0 %v1097_v3 }
  0x4c   :  { %668 = vmatpush2.bf16.msra.mxu1 %v1087_v62 }
  0x4d   :  { %669 = vmatprep.subr.bf16.mxu1 %v1095_v0 }
  0x4e   :  { %635 = vmatpush2.bf16.msra.mxu0 %v1102_v6 }
  0x4f   :  { %974 = vmatprep.subr.bf16.mxu0 %v1109_v11 }
  0x50   :  { %670 = vmatpush2.bf16.msra.mxu1 %v1093_v1 }
  0x51   :  { %671 = vmatprep.subr.bf16.mxu1 %v1101_v4 }
  0x54   :  { %672 = vmatpush2.bf16.msra.mxu1 %v1099_v5 }
  0x55   :  { %673 = vmatprep.subr.bf16.mxu1 %v1105_v7 }
  0x58   :  { %674 = vmatpush2.bf16.msra.mxu1 %v1103_v8 }
  0x59   :  { %675 = vmatprep.subr.bf16.mxu1 %v1108_v9 }
  0x5c   :  { %676 = vmatpush2.bf16.msra.mxu1 %v1106_v10 }
  0xd7   :  { %v152_v19 = vpop.f32.mrf.mxu1 }
  0xd8   :  { %v153_v20 = vadd.f32 %v152_v19, %v57_v17 }
  0xd9   :  { %v154_v22 = vpop.f32.mrf.mxu1 }
  0xda   :  { %v155_v23 = vadd.f32 %v154_v22, %v61_v18  ;;  %v200_v25 = vmax.f32 %v153_v20, 0.0 }
  0xdb   :  { %v156_v26 = vpop.f32.mrf.mxu1 }
  0xdc   :  { %v201_v28 = vmax.f32 %v155_v23, 0.0  ;;  %v204_v33 = vpack.c.bf16 %v200_v25, %v200_v25 }
  0xdd   :  { %v157_v29 = vpop.f32.mrf.mxu1 }
  0xde   :  { %v205_v30 = vpack.c.bf16 %v201_v28, %v201_v28 }
  0xdf   :  { %v193_v34 = vpop.f32.mrf.mxu1 }
  0xe0   :  { %v194_v36 = vadd.f32 %v193_v34, %v65_v27  ;;  %636 = vmatprep.mubr.bf16.mxu0 %v205_v30 }
  0xe1   :  { %v195_v37 = vpop.f32.mrf.mxu1  ;;  %637 = vmatmul.mubr.bf16.vlgmr.msra.gmra.mxu0 %v204_v33 }
  0xe2   :  { %v196_v38 = vadd.f32 %v195_v37, %v69_v31  ;;  %975 = vmatpush3.bf16.msra.mxu0 %v1110_v32  ;;  %v202_v40 = vmax.f32 %v194_v36, 0.0 }
  0xe3   :  { %v197_v41 = vpop.f32.mrf.mxu1  ;;  %976 = vmatprep.subr.bf16.mxu0 %v1111_v35 }
  0xe4   :  { %v203_v43 = vmax.f32 %v196_v38, 0.0  ;;  %v206_v47 = vpack.c.bf16 %v202_v40, %v202_v40 }
  0xe5   :  { %v198_v44 = vpop.f32.mrf.mxu1 }
  0xe6   :  { %v207_v45 = vpack.c.bf16 %v203_v43, %v203_v43  ;;  %977 = vmatpush3.bf16.msra.mxu0 %v1112_v39 }
  0xe7   :  { %978 = vmatprep.subr.bf16.mxu0 %v1113_v42 }
  0xe8   :  { %677 = vmatprep.mubr.bf16.mxu1 %v207_v45 }
  0xe9   :  { %678 = vmatmul.mubr.bf16.vlgmr.msra.gmra.mxu1 %v206_v47 }
  0xea   :  { %979 = vmatpush3.bf16.msra.mxu0 %v1114_v46 }
  0xeb   :  { %980 = vmatprep.subr.bf16.mxu0 %v1115_v48 }
  0xee   :  { %981 = vmatpush3.bf16.msra.mxu0 %v1116_v49 }
  0xef   :  { %982 = vmatprep.subr.bf16.mxu0 %v1117_v50 }
  0xf2   :  { %983 = vmatpush3.bf16.msra.mxu0 %v1118_v51 }
  0xf3   :  { %984 = vmatprep.subr.bf16.mxu0 %v1119_v52 }
  0xf6   :  { %985 = vmatpush3.bf16.msra.mxu0 %v1120_v53 }
  0xf7   :  { %986 = vmatprep.subr.bf16.mxu0 %v1121_v54 }
  0xfa   :  { %987 = vmatpush3.bf16.msra.mxu0 %v1122_v55 }
  0xfb   :  { %988 = vmatprep.subr.bf16.mxu0 %v1123_v56 }
  0xfe   :  { %989 = vmatpush3.bf16.msra.mxu0 %v1124_v57 }
 0x1a1   :  { %v638_v59 = vpop.f32.mrf.mxu0 }
 0x1a2   :  { %v639_v1 = vadd.f32 %v638_v59, %v277_v61 }
 0x1a3   :  { %v640_v60 = vpop.f32.mrf.mxu0 }
 0x1a4   :  { %v641_v3 = vadd.f32 %v640_v60, %v281_v63 }
 0x1a5   :  { %v642_v62 = vpop.f32.mrf.mxu0 }
 0x1a7   :  { %v643_v0 = vpop.f32.mrf.mxu0 }
 0x1a9   :  { %v679_v2 = vpop.f32.mrf.mxu1 }
 0x1aa   :  { %v680_v4 = vadd.f32 %v679_v2, %v639_v1 }
 0x1ab   :  { %v681_v5 = vpop.f32.mrf.mxu1 }
 0x1ac   :  { %v682_v6 = vadd.f32 %v681_v5, %v641_v3  ;;  %v686_v7 = vmax.f32 %v680_v4, 0.0 }
 0x1ad   :  { %v683_v8 = vpop.f32.mrf.mxu1 }
 0x1ae   :  { %v687_v9 = vmax.f32 %v682_v6, 0.0  ;;  %v688_v12 = vpack.c.bf16 %v686_v7, %v686_v7 }
 0x1af   :  { %v684_v10 = vpop.f32.mrf.mxu1 }
 0x1b0   :  { %v689_v11 = vpack.c.bf16 %v687_v9, %v687_v9 }
 0x1b2   :  { %857 = vmatprep.mubr.bf16.mxu0 %v689_v11 }
 0x1b3   :  { %858 = vmatmul.mubr.bf16.vlgmr.msra.gmra.mxu0 %v688_v12 }
 0x273   :  { %v990_v14 = vpop.f32.mrf.mxu0 }
 0x275   :  { %v991_v15 = vpop.f32.mrf.mxu0 }
 0x276   :  { %v992_v16 = vadd.f32 %v991_v15, %v990_v14 }
 0x277   :  { %v993_v17 = vpop.f32.mrf.mxu0 }
 0x278   :  { %v860_v18 = vadd.f32 %v992_v16, %v957_v13 }
 0x279   :  { %v994_v19 = vpop.f32.mrf.mxu0 }
 0x27a   :  { %1125 = vtanh.f32 %v860_v18 }
 0x287   :  { %v1126_v20 = vpop.eup %1125 }
 0x288   :  { %867 = vst.msk [vmem:[#allocation5] sm:$0xff] %vm866_vm1, %v1126_v20 }
 0x289   :  { %1158 = shalt.err (!%p1155_p9)
}
 0x28a   :  { %877 = dma.vmem_to_hbm [thread:$0]  %s875_s9, 128, %s1329_s7, [#allocation4]  }
 0x28b   :  { %1169 = dma.done.wait [#allocation4], 128  }
 0x28c   :  { %1170 = vsyncadd [#allocation4], 4294967168 }
 0x28d   :  { %881 = vsyncpa [#allocation3], 1 }
 0x28e   :  { %882 = vsyncpa [#allocation4], 1 }

</bundles_post_ra>
